<compile_context>
chip_gen: v5e
topology: v5e:2x2
jax: 0.10.0
libtpu: 0.0.40
codegen_flags: <defaults>
</compile_context>

<pallas_src>
import jax
import jax.numpy as jnp
from jax.experimental import pallas as pl
from jax.experimental.pallas import tpu as pltpu

LANE = 128
D_IN = 28 * 28
D_IN_PAD = 896      # 7 * 128  (784 padded)
H1_PAD = 128        # 70 padded
H2_PAD = 128        # 50 padded
OUT_PAD = 128       # num_classes padded


def mlp_kernel(x_ref, w1_ref, b1_ref, w2_ref, b2_ref, w3_ref, b3_ref, o_ref):
    # Three MXU matmuls (bf16 in, f32 accumulate) + f32 bias/ReLU on the VPU.
    x = x_ref[...]                                                   # (TB, 896) bf16

    h1 = jnp.dot(x, w1_ref[...], preferred_element_type=jnp.float32)
    h1 = jnp.maximum(h1 + b1_ref[...], 0.0)                          # (TB, 128) f32

    h2 = jnp.dot(h1.astype(jnp.bfloat16), w2_ref[...],
                 preferred_element_type=jnp.float32)
    h2 = jnp.maximum(h2 + b2_ref[...], 0.0)                          # (TB, 128) f32

    o = jnp.dot(h2.astype(jnp.bfloat16), w3_ref[...],
                preferred_element_type=jnp.float32)
    o_ref[...] = (o + b3_ref[...]).astype(o_ref.dtype)               # bf16 lane-dense store


def _round_up(n, m):
    return ((n + m - 1) // m) * m


def _pad_to(a, shape):
    return jnp.pad(a, [(0, s - d) for d, s in zip(a.shape, shape)])


def _batch_tiling(B, max_tile):
    """Pick (TB, B_pad): TB multiple of 8, grid >= 2 steps whenever B allows it
    (so both v7x TensorCores get work), minimal batch padding."""
    B8 = _round_up(B, 8)
    if B8 <= 8:
        return B8, B8
    steps = max(2, pl.cdiv(B8, max_tile))
    TB = _round_up(pl.cdiv(B8, steps), 8)
    steps = pl.cdiv(B8, TB)
    return TB, steps * TB


def custom_mlp_forward(img, params, *, max_tile=4096):
    """img: (B, 1, 28, 28) float32 (NCHW).  Returns (B, num_classes) float32.

    Call under jax.jit so the x pad/cast producer fuses into the pallas_call
    (allow_input_fusion) instead of materializing x_p in HBM.
    """
    w1, b1, w2, b2, w3, b3 = params
    B = img.shape[0]
    num_classes = w3.shape[1]

    TB, B_pad = _batch_tiling(B, max_tile)
    grid = (B_pad // TB,)

    # Streamed activation: pad to lane width, cast to bf16.  Producer fuses
    # into the kernel's input DMA under jit (allow_input_fusion on operand 0).
    x_p = _pad_to(img.reshape(B, D_IN), (B_pad, D_IN_PAD)).astype(jnp.bfloat16)

    # Resident (constant-index) weights / biases — zero padding is exact.
    w1_p = _pad_to(w1, (D_IN_PAD, H1_PAD)).astype(jnp.bfloat16)
    w2_p = _pad_to(w2, (H1_PAD, H2_PAD)).astype(jnp.bfloat16)
    w3_p = _pad_to(w3, (H2_PAD, OUT_PAD)).astype(jnp.bfloat16)
    b1_p = _pad_to(b1, (1, H1_PAD)).astype(jnp.float32)
    b2_p = _pad_to(b2, (1, H2_PAD)).astype(jnp.float32)
    b3_p = _pad_to(b3, (1, OUT_PAD)).astype(jnp.float32)

    resident = lambda a: pl.BlockSpec(a.shape, lambda i: (0, 0))

    # VMEM budget (per core): 2x x-tile + 2x out-tile + 2x resident weights +
    # f32 h1/h2 live intermediates.  Keep the limit under v7x's 64 MiB/TC.
    w_bytes = ((D_IN_PAD * H1_PAD + H1_PAD * H2_PAD + H2_PAD * OUT_PAD) * 2
               + (H1_PAD + H2_PAD + OUT_PAD) * 4)
    needed = (2 * TB * D_IN_PAD * 2          # double-buffered x (bf16)
              + 2 * TB * OUT_PAD * 2         # double-buffered out (bf16)
              + 2 * w_bytes                  # resident weights/biases
              + 2 * TB * LANE * 4)           # f32 h1/h2 values
    vmem_limit = int(min(max(2 * needed, 32 * 1024 * 1024), 56 * 1024 * 1024))

    flops = 2 * B_pad * (D_IN_PAD * H1_PAD + H1_PAD * H2_PAD + H2_PAD * OUT_PAD)
    bytes_accessed = B_pad * D_IN_PAD * 2 + B_pad * OUT_PAD * 2 + w_bytes

    out = pl.pallas_call(
        mlp_kernel,
        out_shape=jax.ShapeDtypeStruct((B_pad, OUT_PAD), jnp.bfloat16),
        grid_spec=pltpu.PrefetchScalarGridSpec(
            num_scalar_prefetch=0,
            grid=grid,
            in_specs=[
                pl.BlockSpec((TB, D_IN_PAD), lambda i: (i, 0)),   # streamed x
                resident(w1_p), resident(b1_p),
                resident(w2_p), resident(b2_p),
                resident(w3_p), resident(b3_p),
            ],
            out_specs=pl.BlockSpec((TB, OUT_PAD), lambda i: (i, 0)),
        ),
        compiler_params=pltpu.CompilerParams(
            dimension_semantics=("parallel",),        # megacore sharding on v7x
            allow_input_fusion=[True, False, False, False, False, False, False],
            vmem_limit_bytes=vmem_limit,
        ),
        cost_estimate=pl.CostEstimate(
            flops=flops, transcendentals=0, bytes_accessed=bytes_accessed),
    )(x_p, w1_p, b1_p, w2_p, b2_p, w3_p, b3_p)

    return out[:B, :num_classes].astype(jnp.float32)


def init_params(key, num_classes=10):
    """Deterministic init mimicking nn.Linear default (U(-k, k), k=1/sqrt(fan_in))."""
    dims = [(28 * 28, 70), (70, 50), (50, num_classes)]
    params = []
    for fan_in, fan_out in dims:
        key, kw, kb = jax.random.split(key, 3)
        bound = 1.0 / jnp.sqrt(jnp.float32(fan_in))
        w = jax.random.uniform(kw, (fan_in, fan_out), jnp.float32, -bound, bound)
        b = jax.random.uniform(kb, (1, fan_out), jnp.float32, -bound, bound)
        params += [w, b]
    return tuple(params)


def reference_forward(img, params):
    w1, b1, w2, b2, w3, b3 = params
    x = img.reshape(img.shape[0], -1)
    x = jnp.maximum(x @ w1 + b1, 0.0)
    x = jnp.maximum(x @ w2 + b2, 0.0)
    return x @ w3 + b3


if __name__ == "__main__":
    key = jax.random.PRNGKey(0)
    key, kimg = jax.random.split(key)

    B, num_classes = 8, 10
    img = jax.random.normal(kimg, (B, 1, 28, 28), jnp.float32)  # NCHW like PyTorch
    params = init_params(key, num_classes=num_classes)

    fwd = jax.jit(custom_mlp_forward)   # jit so the x pad/cast fuses into the kernel
    out = jax.block_until_ready(fwd(img, params))

    ref = reference_forward(img, params)
    assert out.shape == (B, num_classes)
    # bf16 streamed operands + bf16 output store -> loosened tolerance vs f32 ref.
    err = float(jnp.max(jnp.abs(out - ref)))
    assert jnp.allclose(out, ref, atol=5e-2, rtol=5e-2), err

    print("KERNEL_OK")
</pallas_src>

<mosaic_0001>
module attributes {stable_mosaic.version = 11 : i64} {
  func.func @mlp_kernel(%arg0: i32, %arg1: memref<8x896xbf16, #tpu.memory_space<vmem>>, %arg2: memref<896x128xbf16, #tpu.memory_space<vmem>>, %arg3: memref<1x128xf32, #tpu.memory_space<vmem>>, %arg4: memref<128x128xbf16, #tpu.memory_space<vmem>>, %arg5: memref<1x128xf32, #tpu.memory_space<vmem>>, %arg6: memref<128x128xbf16, #tpu.memory_space<vmem>>, %arg7: memref<1x128xf32, #tpu.memory_space<vmem>>, %arg8: memref<8x128xbf16, #tpu.memory_space<vmem>>) attributes {dimension_semantics = [#tpu.dimension_semantics<parallel>], iteration_bounds = array<i64: 1>, scalar_prefetch = 0 : i64, scratch_operands = 0 : i64, tpu.core_type = #tpu.core_type<tc>, window_params = [{transform_indices = @transform_0, window_bounds = array<i64: 8, 896>}, {pipeline_mode = #tpu.pipeline_mode<synchronous>, transform_indices = @transform_1, window_bounds = array<i64: 896, 128>}, {pipeline_mode = #tpu.pipeline_mode<synchronous>, transform_indices = @transform_2, window_bounds = array<i64: 1, 128>}, {pipeline_mode = #tpu.pipeline_mode<synchronous>, transform_indices = @transform_3, window_bounds = array<i64: 128, 128>}, {pipeline_mode = #tpu.pipeline_mode<synchronous>, transform_indices = @transform_4, window_bounds = array<i64: 1, 128>}, {pipeline_mode = #tpu.pipeline_mode<synchronous>, transform_indices = @transform_5, window_bounds = array<i64: 128, 128>}, {pipeline_mode = #tpu.pipeline_mode<synchronous>, transform_indices = @transform_6, window_bounds = array<i64: 1, 128>}, {transform_indices = @transform_7, window_bounds = array<i64: 8, 128>}]} {
    %c0 = arith.constant 0 : index
    %c0_0 = arith.constant 0 : index
    %0 = vector.load %arg1[%c0, %c0_0] : memref<8x896xbf16, #tpu.memory_space<vmem>>, vector<8x896xbf16>
    %c0_1 = arith.constant 0 : index
    %c0_2 = arith.constant 0 : index
    %1 = vector.load %arg2[%c0_1, %c0_2] : memref<896x128xbf16, #tpu.memory_space<vmem>>, vector<896x128xbf16>
    %cst = arith.constant dense<0.000000e+00> : vector<8x128xf32>
    %2 = tpu.matmul %0, %1, %cst {dimension_numbers = #tpu.dot_dimension_numbers<[1], [0], [0], [1], [0, 0, 1, 1], [], []>} : vector<8x896xbf16>, vector<896x128xbf16>, vector<8x128xf32> -> vector<8x128xf32>
    %c0_3 = arith.constant 0 : index
    %c0_4 = arith.constant 0 : index
    %3 = vector.load %arg3[%c0_3, %c0_4] : memref<1x128xf32, #tpu.memory_space<vmem>>, vector<1x128xf32>
    %4 = vector.broadcast %3 : vector<1x128xf32> to vector<8x128xf32>
    %5 = arith.addf %2, %4 : vector<8x128xf32>
    %cst_5 = arith.constant 0.000000e+00 : f32
    %6 = vector.broadcast %cst_5 : f32 to vector<8x128xf32>
    %7 = arith.maximumf %5, %6 : vector<8x128xf32>
    %8 = arith.truncf %7 : vector<8x128xf32> to vector<8x128xbf16>
    %c0_6 = arith.constant 0 : index
    %c0_7 = arith.constant 0 : index
    %9 = vector.load %arg4[%c0_6, %c0_7] : memref<128x128xbf16, #tpu.memory_space<vmem>>, vector<128x128xbf16>
    %cst_8 = arith.constant dense<0.000000e+00> : vector<8x128xf32>
    %10 = tpu.matmul %8, %9, %cst_8 {dimension_numbers = #tpu.dot_dimension_numbers<[1], [0], [0], [1], [0, 0, 1, 1], [], []>} : vector<8x128xbf16>, vector<128x128xbf16>, vector<8x128xf32> -> vector<8x128xf32>
    %c0_9 = arith.constant 0 : index
    %c0_10 = arith.constant 0 : index
    %11 = vector.load %arg5[%c0_9, %c0_10] : memref<1x128xf32, #tpu.memory_space<vmem>>, vector<1x128xf32>
    %12 = vector.broadcast %11 : vector<1x128xf32> to vector<8x128xf32>
    %13 = arith.addf %10, %12 : vector<8x128xf32>
    %cst_11 = arith.constant 0.000000e+00 : f32
    %14 = vector.broadcast %cst_11 : f32 to vector<8x128xf32>
    %15 = arith.maximumf %13, %14 : vector<8x128xf32>
    %16 = arith.truncf %15 : vector<8x128xf32> to vector<8x128xbf16>
    %c0_12 = arith.constant 0 : index
    %c0_13 = arith.constant 0 : index
    %17 = vector.load %arg6[%c0_12, %c0_13] : memref<128x128xbf16, #tpu.memory_space<vmem>>, vector<128x128xbf16>
    %cst_14 = arith.constant dense<0.000000e+00> : vector<8x128xf32>
    %18 = tpu.matmul %16, %17, %cst_14 {dimension_numbers = #tpu.dot_dimension_numbers<[1], [0], [0], [1], [0, 0, 1, 1], [], []>} : vector<8x128xbf16>, vector<128x128xbf16>, vector<8x128xf32> -> vector<8x128xf32>
    %c0_15 = arith.constant 0 : index
    %c0_16 = arith.constant 0 : index
    %19 = vector.load %arg7[%c0_15, %c0_16] : memref<1x128xf32, #tpu.memory_space<vmem>>, vector<1x128xf32>
    %20 = vector.broadcast %19 : vector<1x128xf32> to vector<8x128xf32>
    %21 = arith.addf %18, %20 : vector<8x128xf32>
    %22 = arith.truncf %21 : vector<8x128xf32> to vector<8x128xbf16>
    %c0_17 = arith.constant 0 : index
    %c0_18 = arith.constant 0 : index
    %23 = vector.load %arg8[%c0_17, %c0_18] : memref<8x128xbf16, #tpu.memory_space<vmem>>, vector<8x128xbf16>
    tpu.vector_store %arg8[%c0_17, %c0_18], %22 {strides = array<i32>} : memref<8x128xbf16, #tpu.memory_space<vmem>>, vector<8x128xbf16>,
    return
  }
  func.func @transform_0(%arg0: i32) -> (i32, i32) {
    %c0_i32 = arith.constant 0 : i32
    %c0_i32_0 = arith.constant 0 : i32
    return %arg0, %c0_i32 : i32, i32
  }
  func.func @transform_1(%arg0: i32) -> (i32, i32) {
    %c0_i32 = arith.constant 0 : i32
    %c0_i32_0 = arith.constant 0 : i32
    %c0_i32_1 = arith.constant 0 : i32
    return %c0_i32, %c0_i32_0 : i32, i32
  }
  func.func @transform_2(%arg0: i32) -> (i32, i32) {
    %c0_i32 = arith.constant 0 : i32
    %c0_i32_0 = arith.constant 0 : i32
    %c0_i32_1 = arith.constant 0 : i32
    return %c0_i32, %c0_i32_0 : i32, i32
  }
  func.func @transform_3(%arg0: i32) -> (i32, i32) {
    %c0_i32 = arith.constant 0 : i32
    %c0_i32_0 = arith.constant 0 : i32
    %c0_i32_1 = arith.constant 0 : i32
    return %c0_i32, %c0_i32_0 : i32, i32
  }
  func.func @transform_4(%arg0: i32) -> (i32, i32) {
    %c0_i32 = arith.constant 0 : i32
    %c0_i32_0 = arith.constant 0 : i32
    %c0_i32_1 = arith.constant 0 : i32
    return %c0_i32, %c0_i32_0 : i32, i32
  }
  func.func @transform_5(%arg0: i32) -> (i32, i32) {
    %c0_i32 = arith.constant 0 : i32
    %c0_i32_0 = arith.constant 0 : i32
    %c0_i32_1 = arith.constant 0 : i32
    return %c0_i32, %c0_i32_0 : i32, i32
  }
  func.func @transform_6(%arg0: i32) -> (i32, i32) {
    %c0_i32 = arith.constant 0 : i32
    %c0_i32_0 = arith.constant 0 : i32
    %c0_i32_1 = arith.constant 0 : i32
    return %c0_i32, %c0_i32_0 : i32, i32
  }
  func.func @transform_7(%arg0: i32) -> (i32, i32) {
    %c0_i32 = arith.constant 0 : i32
    %c0_i32_0 = arith.constant 0 : i32
    return %arg0, %c0_i32 : i32, i32
  }
}

</mosaic_0001>

<bundles_post_ra>
// kernel: custom_mlp_forward.2
= control target key start
LH: loop header
LB: loop body
LE: loop exit
PB: predicated region body
PF: predicated region fallthrough
CT: control target
= control target key end

     0   :  { %s1566_s0 = inlined_call_operand.vmem [shape: bf16[896,128], index: 0, kind: input, shape index: {}]   ;;  %s1567_s1 = inlined_call_operand.vmem [shape: f32[1,128], index: 1, kind: input, shape index: {}]   ;;  %s1568_s2 = inlined_call_operand.vmem [shape: bf16[128,128], index: 2, kind: input, shape index: {}]   ;;  %s1569_s3 = inlined_call_operand.vmem [shape: f32[1,128], index: 3, kind: input, shape index: {}]   ;;  %s1570_s4 = inlined_call_operand.vmem [shape: bf16[128,128], index: 4, kind: input, shape index: {}]   ;;  %s1571_s5 = inlined_call_operand.vmem [shape: f32[1,128], index: 5, kind: input, shape index: {}]   ;;  %s1572_s6 = inlined_call_operand.vmem [shape: bf16[8,784], index: 6, kind: input, shape index: {}]   ;;  %s1573_s7 = inlined_call_operand.<no memory space> [shape: bf16[], index: 7, kind: input, shape index: {}]   ;;  %s1574_s8 = inlined_call_operand.vmem [shape: bf16[8,128], index: 8, kind: output, shape index: {}]  }
   0x1   :  { %v13_v0 = vstv %s1573_s7 }
   0x2   :  { %v14_v1 = vunpack.i.l.bf16 %v13_v0 }
   0x3   :  { %v1182_v2 = vld [vmem:[%s1566_s0 + $0x38] sm:$0xff]  ;;  %v1181_v5 = vld [vmem:[%s1566_s0 + $0x30] sm:$0xff]  ;;  %v1180_v9 = vld [vmem:[%s1566_s0 + $0x28] sm:$0xff]  ;;  %v127_v13 = vlaneseq }
   0x4   :  { %v1190_v3 = vld [vmem:[%s1566_s0 + $0x78] sm:$0xff]  ;;  %618 = vmatpush.bf16.msra.mxu0 %v1182_v2  ;;  %v1189_v6 = vld [vmem:[%s1566_s0 + $0x70] sm:$0xff]  ;;  %v1188_v10 = vld [vmem:[%s1566_s0 + $0x68] sm:$0xff] }
   0x5   :  { %v1198_v4 = vld [vmem:[%s1566_s0 + $0xb8] sm:$0xff]  ;;  %631 = vmatpush.bf16.msra.mxu1 %v1190_v3  ;;  %v1197_v7 = vld [vmem:[%s1566_s0 + $0xb0] sm:$0xff]  ;;  %v1196_v11 = vld [vmem:[%s1566_s0 + $0xa8] sm:$0xff]  ;;  %v128_v18 = vand.u32 127, %v127_v13 }
   0x6   :  { %644 = vmatpush.bf16.msra.mxu2 %v1198_v4  ;;  %v1206_v8 = vld [vmem:[%s1566_s0 + $0xf8] sm:$0xff]  ;;  %v1205_v12 = vld [vmem:[%s1566_s0 + $0xf0] sm:$0xff]  ;;  %v1179_v14 = vld [vmem:[%s1566_s0 + $0x20] sm:$0xff] }
   0x7   :  { %657 = vmatpush.bf16.msra.mxu3 %v1206_v8  ;;  %v1187_v15 = vld [vmem:[%s1566_s0 + $0x60] sm:$0xff]  ;;  %v1204_v17 = vld [vmem:[%s1566_s0 + $0xe8] sm:$0xff]  ;;  %v129_v21 = vadd.s32 768, %v128_v18  ;;  %v1178_v22 = vld [vmem:[%s1566_s0 + $0x18] sm:$0xff] }
   0x8   :  { %619 = vmatpush.bf16.msra.mxu0 %v1181_v5  ;;  %v1195_v16 = vld [vmem:[%s1566_s0 + $0xa0] sm:$0xff]  ;;  %v1366_v19 = vld [vmem:[%s1572_s6 + $0x8] sm:$0xff]  ;;  %v1186_v23 = vld [vmem:[%s1566_s0 + $0x58] sm:$0xff] }
   0x9   :  { %632 = vmatpush.bf16.msra.mxu1 %v1189_v6  ;;  %v32_v20 = vld [vmem:[%s1572_s6] sm:$0xff]   ;;  %v1194_v24 = vld [vmem:[%s1566_s0 + $0x98] sm:$0xff]  ;;  %vm130_vm0 = vcmp.lt.s32.totalorder %v129_v21, 784  ;;  %v1177_v28 = vld [vmem:[%s1566_s0 + $0x10] sm:$0xff]  ;;  %v263_v43 = vunpack.c.l.b16 %v1366_v19  ;;  %v264_v57 = vunpack.c.h.b16 %v1366_v19 }
   0xa   :  { %645 = vmatpush.bf16.msra.mxu2 %v1197_v7  ;;  %v1203_v25 = vld [vmem:[%s1566_s0 + $0xe0] sm:$0xff]  ;;  %43 = vst [vmem:[#allocation7] sm:$0xff] %v32_v20   ;;  %v886_v26 = vld [vmem:[%s1572_s6 + $0x18] sm:$0xf]  ;;  %v1185_v29 = vld [vmem:[%s1566_s0 + $0x50] sm:$0xff] }
   0xb   :  { %658 = vmatpush.bf16.msra.mxu3 %v1205_v12  ;;  %v125_v27 = vunpack.c.l.bf16 %v886_v26  ;;  %v1193_v30 = vld [vmem:[%s1566_s0 + $0x90] sm:$0xff]  ;;  %v1202_v31 = vld [vmem:[%s1566_s0 + $0xd8] sm:$0xff]  ;;  %v1176_v34 = vld [vmem:[%s1566_s0 + $0x8] sm:$0xff]  ;;  %v270_v51 = vpack.c.b16 %v263_v43, %v263_v43  ;;  %v271_v61 = vpack.c.b16 %v264_v57, %v264_v57 }
   0xc   :  { %620 = vmatpush.bf16.msra.mxu0 %v1180_v9  ;;  %v1184_v35 = vld [vmem:[%s1566_s0 + $0x48] sm:$0xff]  ;;  %v1201_v38 = vld [vmem:[%s1566_s0 + $0xd0] sm:$0xff]  ;;  %v1175_v41 = vld [vmem:[%s1566_s0] sm:$0xff] }
   0xd   :  { %633 = vmatpush.bf16.msra.mxu1 %v1188_v10  ;;  %v131_v32 = vsel %vm130_vm0, %v125_v27, %v14_v1  ;;  %v1192_v37 = vld [vmem:[%s1566_s0 + $0x88] sm:$0xff]  ;;  %v1413_v40 = vld [vmem:[%s1572_s6 + $0x10] sm:$0xff]  ;;  %v1183_v42 = vld [vmem:[%s1566_s0 + $0x40] sm:$0xff] }
   0xe   :  { %646 = vmatpush.bf16.msra.mxu2 %v1196_v11  ;;  %v133_v33 = vpack.c.bf16 0.0, %v131_v32  ;;  %v1191_v45 = vld [vmem:[%s1566_s0 + $0x80] sm:$0xff]  ;;  %v1214_v46 = vld [vmem:[%s1566_s0 + $0x138] sm:$0xff]  ;;  %v1200_v50 = vld [vmem:[%s1566_s0 + $0xc8] sm:$0xff]  ;;  %v265_v11 = vunpack.c.l.b16 %v1413_v40  ;;  %v266_v13 = vunpack.c.h.b16 %v1413_v40 }
   0xf   :  { %659 = vmatpush.bf16.msra.mxu3 %v1204_v17  ;;  %v1222_v47 = vld [vmem:[%s1566_s0 + $0x178] sm:$0xff]  ;;  %v1213_v53 = vld [vmem:[%s1566_s0 + $0x130] sm:$0xff]  ;;  %v1199_v56 = vld [vmem:[%s1566_s0 + $0xc0] sm:$0xff] }
  0x10   :  { %621 = vmatpush.bf16.msra.mxu0 %v1179_v14  ;;  %136 = vst [vmem:[#allocation7 + $0x18] sm:$0xf] %v133_v33  ;;  %v1230_v48 = vld [vmem:[%s1566_s0 + $0x1b8] sm:$0xff]  ;;  %v1221_v54 = vld [vmem:[%s1566_s0 + $0x170] sm:$0xff]  ;;  %v1212_v58 = vld [vmem:[%s1566_s0 + $0x128] sm:$0xff]  ;;  %v272_v17 = vpack.c.b16 %v265_v11, %v265_v11  ;;  %v273_v18 = vpack.c.b16 %v266_v13, %v266_v13 }
  0x11   :  { %634 = vmatpush.bf16.msra.mxu1 %v1187_v15  ;;  %v137_v36 = vld [vmem:[#allocation7] sm:$0xff]  ;;  %v1229_v55 = vld [vmem:[%s1566_s0 + $0x1b0] sm:$0xff]  ;;  %v1220_v59 = vld [vmem:[%s1566_s0 + $0x168] sm:$0xff] }
  0x12   :  { %647 = vmatpush.bf16.msra.mxu2 %v1195_v16  ;;  %v261_v39 = vunpack.c.l.b16 %v137_v36  ;;  %v262_v44 = vunpack.c.h.b16 %v137_v36  ;;  %v1228_v60 = vld [vmem:[%s1566_s0 + $0x1a8] sm:$0xff]  ;;  %v1211_v62 = vld [vmem:[%s1566_s0 + $0x120] sm:$0xff]  ;;  %v1210_v1 = vld [vmem:[%s1566_s0 + $0x118] sm:$0xff] }
  0x13   :  { %660 = vmatpush.bf16.msra.mxu3 %v1203_v25  ;;  %v1219_v63 = vld [vmem:[%s1566_s0 + $0x160] sm:$0xff]  ;;  %v1218_v2 = vld [vmem:[%s1566_s0 + $0x158] sm:$0xff]  ;;  %v1209_v4 = vld [vmem:[%s1566_s0 + $0x110] sm:$0xff] }
  0x14   :  { %622 = vmatpush.bf16.msra.mxu0 %v1178_v22  ;;  %v268_v49 = vpack.c.b16 %v261_v39, %v261_v39  ;;  %v269_v52 = vpack.c.b16 %v262_v44, %v262_v44  ;;  %v1227_v0 = vld [vmem:[%s1566_s0 + $0x1a0] sm:$0xff]  ;;  %v1226_v3 = vld [vmem:[%s1566_s0 + $0x198] sm:$0xff]  ;;  %v1217_v5 = vld [vmem:[%s1566_s0 + $0x150] sm:$0xff] }
  0x15   :  { %635 = vmatpush.bf16.msra.mxu1 %v1186_v23  ;;  %v1225_v6 = vld [vmem:[%s1566_s0 + $0x190] sm:$0xff]  ;;  %v1208_v7 = vld [vmem:[%s1566_s0 + $0x108] sm:$0xff]  ;;  %v1207_v12 = vld [vmem:[%s1566_s0 + $0x100] sm:$0xff] }
  0x16   :  { %648 = vmatpush.bf16.msra.mxu2 %v1194_v24  ;;  %v1216_v8 = vld [vmem:[%s1566_s0 + $0x148] sm:$0xff]  ;;  %v1215_v15 = vld [vmem:[%s1566_s0 + $0x140] sm:$0xff]  ;;  %v1238_v20 = vld [vmem:[%s1568_s2 + $0x38] sm:$0xff] }
  0x17   :  { %661 = vmatpush.bf16.msra.mxu3 %v1202_v31  ;;  %v1224_v9 = vld [vmem:[%s1566_s0 + $0x188] sm:$0xff]  ;;  %v140_v10 = vld [vmem:[#allocation7 + $0x18] sm:$0xf]  ;;  %v1223_v16 = vld [vmem:[%s1566_s0 + $0x180] sm:$0xff] }
  0x18   :  { %623 = vmatpush.bf16.msra.mxu0 %v1177_v28  ;;  %v267_v14 = vunpack.c.l.b16 %v140_v10  ;;  %v1237_v21 = vld [vmem:[%s1568_s2 + $0x30] sm:$0xff]  ;;  %v1236_v22 = vld [vmem:[%s1568_s2 + $0x28] sm:$0xff]  ;;  %v1235_v23 = vld [vmem:[%s1568_s2 + $0x20] sm:$0xff] }
  0x19   :  { %636 = vmatpush.bf16.msra.mxu1 %v1185_v29  ;;  %v1234_v24 = vld [vmem:[%s1568_s2 + $0x18] sm:$0xff]  ;;  %v1233_v25 = vld [vmem:[%s1568_s2 + $0x10] sm:$0xff]  ;;  %v1232_v28 = vld [vmem:[%s1568_s2 + $0x8] sm:$0xff] }
  0x1a   :  { %649 = vmatpush.bf16.msra.mxu2 %v1193_v30  ;;  %v274_v19 = vpack.c.b16 %v267_v14, %v267_v14  ;;  %v1231_v29 = vld [vmem:[%s1568_s2] sm:$0xff]  ;;  %v1246_v33 = vld [vmem:[%s1570_s4 + $0x38] sm:$0xff]  ;;  %v1245_v36 = vld [vmem:[%s1570_s4 + $0x30] sm:$0xff] }
  0x1b   :  { %662 = vmatpush.bf16.msra.mxu3 %v1201_v38  ;;  %v1244_v39 = vld [vmem:[%s1570_s4 + $0x28] sm:$0xff]  ;;  %v1242_v44 = vld [vmem:[%s1570_s4 + $0x18] sm:$0xff] }
  0x1c   :  { %624 = vmatpush.bf16.msra.mxu0 %v1176_v34  ;;  %v1267_v34 = vld [vmem:[%s1567_s1] ss:$0 sm:$0xff] }
  0x1d   :  { %637 = vmatpush.bf16.msra.mxu1 %v1184_v35 }
  0x1e   :  { %650 = vmatpush.bf16.msra.mxu2 %v1192_v37 }
  0x1f   :  { %663 = vmatpush.bf16.msra.mxu3 %v1200_v50 }
  0x20   :  { %625 = vmatpush.bf16.msra.mxu0 %v1175_v41 }
  0x21   :  { %638 = vmatpush.bf16.msra.mxu1 %v1183_v42  ;;  %v1243_v42 = vld [vmem:[%s1570_s4 + $0x20] sm:$0xff] }
  0x22   :  { %651 = vmatpush.bf16.msra.mxu2 %v1191_v45 }
  0x23   :  { %626 = vmatmul.bf16.vlgmr.msra.gmra.mxu0 %v268_v49  ;;  %664 = vmatpush.bf16.msra.mxu3 %v1199_v56 }
  0x24   :  { %670 = vmatpush.bf16.msrb.mxu0 %v1214_v46  ;;  %639 = vmatmul.bf16.vlgmr.msra.gmra.mxu1 %v269_v52 }
  0x25   :  { %683 = vmatpush.bf16.msrb.mxu1 %v1222_v47  ;;  %652 = vmatmul.bf16.vlgmr.msra.gmra.mxu2 %v270_v51 }
  0x26   :  { %696 = vmatpush.bf16.msrb.mxu2 %v1230_v48  ;;  %665 = vmatmul.bf16.vlgmr.msra.gmra.mxu3 %v271_v61  ;;  %v1241_v48 = vld [vmem:[%s1570_s4 + $0x10] sm:$0xff] }
  0x27   :  { %779 = vmatpush.bf16.msrb.mxu3 %v1238_v20 }
  0x28   :  { %671 = vmatpush.bf16.msrb.mxu0 %v1213_v53 }
  0x29   :  { %684 = vmatpush.bf16.msrb.mxu1 %v1221_v54 }
  0x2a   :  { %697 = vmatpush.bf16.msrb.mxu2 %v1229_v55 }
  0x2b   :  { %780 = vmatpush.bf16.msrb.mxu3 %v1237_v21 }
  0x2c   :  { %672 = vmatpush.bf16.msrb.mxu0 %v1212_v58  ;;  %v1240_v58 = vld [vmem:[%s1570_s4 + $0x8] sm:$0xff] }
  0x2d   :  { %685 = vmatpush.bf16.msrb.mxu1 %v1220_v59  ;;  %v1239_v59 = vld [vmem:[%s1570_s4] sm:$0xff] }
  0x2e   :  { %698 = vmatpush.bf16.msrb.mxu2 %v1228_v60  ;;  %v1268_v60 = vld [vmem:[%s1569_s3] ss:$0 sm:$0xff] }
  0x2f   :  { %781 = vmatpush.bf16.msrb.mxu3 %v1236_v22 }
  0x30   :  { %673 = vmatpush.bf16.msrb.mxu0 %v1211_v62 }
  0x31   :  { %686 = vmatpush.bf16.msrb.mxu1 %v1219_v63 }
  0x32   :  { %699 = vmatpush.bf16.msrb.mxu2 %v1227_v0 }
  0x33   :  { %782 = vmatpush.bf16.msrb.mxu3 %v1235_v23 }
  0x34   :  { %674 = vmatpush.bf16.msrb.mxu0 %v1210_v1 }
  0x35   :  { %687 = vmatpush.bf16.msrb.mxu1 %v1218_v2  ;;  %v1269_v2 = vld [vmem:[%s1571_s5] ss:$0 sm:$0xff] }
  0x36   :  { %700 = vmatpush.bf16.msrb.mxu2 %v1226_v3 }
  0x37   :  { %783 = vmatpush.bf16.msrb.mxu3 %v1234_v24 }
  0x38   :  { %675 = vmatpush.bf16.msrb.mxu0 %v1209_v4 }
  0x39   :  { %688 = vmatpush.bf16.msrb.mxu1 %v1217_v5 }
  0x3a   :  { %701 = vmatpush.bf16.msrb.mxu2 %v1225_v6 }
  0x3b   :  { %784 = vmatpush.bf16.msrb.mxu3 %v1233_v25 }
  0x3c   :  { %676 = vmatpush.bf16.msrb.mxu0 %v1208_v7 }
  0x3d   :  { %689 = vmatpush.bf16.msrb.mxu1 %v1216_v8 }
  0x3e   :  { %702 = vmatpush.bf16.msrb.mxu2 %v1224_v9 }
  0x3f   :  { %785 = vmatpush.bf16.msrb.mxu3 %v1232_v28 }
  0x40   :  { %677 = vmatpush.bf16.msrb.mxu0 %v1207_v12 }
  0x41   :  { %690 = vmatpush.bf16.msrb.mxu1 %v1215_v15 }
  0x42   :  { %703 = vmatpush.bf16.msrb.mxu2 %v1223_v16 }
  0x43   :  { %678 = vmatmul.bf16.vlgmr.msrb.gmra.mxu0 %v272_v17  ;;  %786 = vmatpush.bf16.msrb.mxu3 %v1231_v29 }
  0x44   :  { %691 = vmatmul.bf16.vlgmr.msrb.gmra.mxu1 %v273_v18  ;;  %862 = vmatpush.bf16.msra.mxu0 %v1246_v33 }
  0x45   :  { %704 = vmatmul.bf16.vlgmr.msrb.gmra.mxu2 %v274_v19 }
  0x48   :  { %863 = vmatpush.bf16.msra.mxu0 %v1245_v36 }
  0x4c   :  { %864 = vmatpush.bf16.msra.mxu0 %v1244_v39 }
  0x50   :  { %865 = vmatpush.bf16.msra.mxu0 %v1243_v42 }
  0x54   :  { %866 = vmatpush.bf16.msra.mxu0 %v1242_v44 }
  0x58   :  { %867 = vmatpush.bf16.msra.mxu0 %v1241_v48 }
  0x5c   :  { %868 = vmatpush.bf16.msra.mxu0 %v1240_v58 }
  0x60   :  { %869 = vmatpush.bf16.msra.mxu0 %v1239_v59 }
  0xa0   :  { %v627_v26 = vpop.f32.mrf.mxu0 }
  0xa1   :  { %v640_v27 = vpop.f32.mrf.mxu1  ;;  %v628_v38 = vadd.f32 %v1267_v34, %v627_v26 }
  0xa3   :  { %v641_v40 = vadd.f32 %v640_v27, %v628_v38 }
  0xa8   :  { %v653_v30 = vpop.f32.mrf.mxu2  ;;  %v629_v31 = vpop.f32.mrf.mxu0 }
  0xa9   :  { %v642_v32 = vpop.f32.mrf.mxu1  ;;  %v666_v35 = vpop.f32.mrf.mxu3  ;;  %v654_v43 = vadd.f32 %v653_v30, %v641_v40 }
  0xab   :  { %v667_v45 = vadd.f32 %v666_v35, %v654_v43 }
  0xb0   :  { %v655_v37 = vpop.f32.mrf.mxu2 }
  0xb1   :  { %v668_v41 = vpop.f32.mrf.mxu3 }
  0xc0   :  { %v679_v46 = vpop.f32.mrf.mxu0 }
  0xc1   :  { %v692_v47 = vpop.f32.mrf.mxu1  ;;  %v680_v49 = vadd.f32 %v679_v46, %v667_v45 }
  0xc3   :  { %v693_v50 = vadd.f32 %v692_v47, %v680_v49 }
  0xc8   :  { %v705_v51 = vpop.f32.mrf.mxu2  ;;  %v681_v53 = vpop.f32.mrf.mxu0 }
  0xc9   :  { %v706_v52 = vadd.f32 %v705_v51, %v693_v50  ;;  %v694_v54 = vpop.f32.mrf.mxu1 }
  0xcb   :  { %v709_v55 = vmax.f32 %v706_v52, 0.0 }
  0xcd   :  { %v710_v56 = vpack.c.bf16 %v709_v55, %v709_v55 }
  0xcf   :  { %787 = vmatmul.bf16.vlgmr.msrb.gmra.mxu3 %v710_v56 }
  0xd0   :  { %v707_v57 = vpop.f32.mrf.mxu2 }
 0x152   :  { %v788_v61 = vpop.f32.mrf.mxu3 }
 0x153   :  { %v789_v62 = vadd.f32 %v1268_v60, %v788_v61 }
 0x155   :  { %v792_v63 = vmax.f32 %v789_v62, 0.0 }
 0x157   :  { %v793_v0 = vpack.c.bf16 %v792_v63, %v792_v63 }
 0x159   :  { %870 = vmatmul.bf16.vlgmr.msra.gmra.mxu0 %v793_v0 }
 0x15a   :  { %v790_v1 = vpop.f32.mrf.mxu3 }
 0x1d6   :  { %v871_v3 = vpop.f32.mrf.mxu0 }
 0x1d7   :  { %v872_v4 = vadd.f32 %v1269_v2, %v871_v3 }
 0x1d9   :  { %v875_v5 = vpack.c.bf16 %v872_v4, %v872_v4 }
 0x1db   :  { %876 = vst [vmem:[%s1574_s8] sm:$0xf] %v875_v5 }
 0x1de   :  { %v873_v6 = vpop.f32.mrf.mxu0 }

</bundles_post_ra>
